<compile_context>
chip_gen: v7x
topology: tpu7x:2x2x1
jax: 0.10.0
libtpu: 0.0.40
codegen_flags: <defaults>
</compile_context>

<pallas_src>
import jax
import jax.numpy as jnp
from jax.experimental import pallas as pl
from jax.experimental.pallas import tpu as pltpu


def _round_up(x, m):
    return ((x + m - 1) // m) * m


# ----------------------------------------------------------------------------
# Kernel: one grid step = one (batch-tile, level) pair.
#   Level i:  h      = relu(x @ W1x[i] + prev_logits @ W1prev[i] + b1[i])
#             logits = h @ W2[i] + b2[i]
#   prev_logits is carried in VMEM scratch across the level axis.
# ----------------------------------------------------------------------------
def _fused_heads_kernel(x_ref, w1x_ref, w1p_ref, b1_ref, w2_ref, b2_ref,
                        o_ref, prev_ref):
    level = pl.program_id(1)

    # First level of each batch tile: no previous logits.
    @pl.when(level == 0)
    def _():
        prev_ref[...] = jnp.zeros_like(prev_ref)

    x = x_ref[...]                                   # (tb, F_pad) bf16
    prev = prev_ref[...].astype(x.dtype)             # (tb, C_pad) bf16

    # Split matmul replaces concat((x, prev_logits)) @ W1 (exact for level 0
    # because prev == 0 and the corresponding W1prev rows are zero).
    h = jnp.dot(x, w1x_ref[0], preferred_element_type=jnp.float32)
    h = h + jnp.dot(prev, w1p_ref[0], preferred_element_type=jnp.float32)
    h = h + b1_ref[0]                                # f32 epilogue
    h = jnp.maximum(h, 0.0)
    # TODO(synk): training-mode dropout (pltpu.prng_seed/prng_random_bits mask)
    # not implemented; forward matches eval()/inference semantics.

    logits = jnp.dot(h.astype(w2_ref.dtype), w2_ref[0],
                     preferred_element_type=jnp.float32)
    logits = logits + b2_ref[0]                      # (tb, C_pad) f32

    o_ref[0] = logits.astype(o_ref.dtype)            # lane-dense store
    prev_ref[...] = logits                           # carry to next level


# ----------------------------------------------------------------------------
# Parameter init (matches the PyTorch module's shapes; weights stored (in, out))
# ----------------------------------------------------------------------------
def init_multilevel_head_params(key, in_features, class_sizes):
    params = []
    for i, num_classes in enumerate(class_sizes):
        fin = in_features if i == 0 else in_features + class_sizes[i - 1]
        hidden = fin // 2
        key, k1, k2, k3, k4 = jax.random.split(key, 5)
        s1 = 1.0 / jnp.sqrt(jnp.float32(fin))
        s2 = 1.0 / jnp.sqrt(jnp.float32(hidden))
        w1 = jax.random.uniform(k1, (fin, hidden), jnp.float32, -s1, s1)
        b1 = jax.random.uniform(k2, (1, hidden), jnp.float32, -s1, s1)
        w2 = jax.random.uniform(k3, (hidden, num_classes), jnp.float32, -s2, s2)
        b2 = jax.random.uniform(k4, (1, num_classes), jnp.float32, -s2, s2)
        params.append((w1, b1, w2, b2))
    return params


# ----------------------------------------------------------------------------
# Pack per-level params into stacked, zero-padded, lane-aligned tensors.
# ----------------------------------------------------------------------------
def pack_multilevel_params(params, in_features, class_sizes,
                           compute_dtype=jnp.bfloat16):
    L = len(class_sizes)
    F = in_features
    F_pad = _round_up(F, 128)
    hiddens = [(F if i == 0 else F + class_sizes[i - 1]) // 2 for i in range(L)]
    H_pad = _round_up(max(hiddens), 128)
    C_pad = _round_up(max(class_sizes), 128)

    w1x = jnp.zeros((L, F_pad, H_pad), compute_dtype)
    w1p = jnp.zeros((L, C_pad, H_pad), compute_dtype)
    b1s = jnp.zeros((L, 1, H_pad), jnp.float32)
    w2s = jnp.zeros((L, H_pad, C_pad), compute_dtype)
    b2s = jnp.zeros((L, 1, C_pad), jnp.float32)

    for i, (w1, b1, w2, b2) in enumerate(params):
        hidden = hiddens[i]
        c = class_sizes[i]
        # rows [0, F) of w1 act on x; rows [F, F + C_prev) act on prev logits
        w1x = w1x.at[i, :F, :hidden].set(w1[:F, :].astype(compute_dtype))
        if i > 0:
            c_prev = class_sizes[i - 1]
            w1p = w1p.at[i, :c_prev, :hidden].set(
                w1[F:F + c_prev, :].astype(compute_dtype))
        b1s = b1s.at[i, 0, :hidden].set(b1.reshape(-1))
        w2s = w2s.at[i, :hidden, :c].set(w2.astype(compute_dtype))
        b2s = b2s.at[i, 0, :c].set(b2.reshape(-1))

    return dict(w1x=w1x, w1p=w1p, b1=b1s, w2=w2s, b2=b2s,
                class_sizes=tuple(class_sizes), in_features=F,
                F_pad=F_pad, H_pad=H_pad, C_pad=C_pad)


# ----------------------------------------------------------------------------
# Forward: one fused pallas_call for all levels.
# ----------------------------------------------------------------------------
def multilevel_classification_head(x, packed, *, max_batch_tile=256):
    class_sizes = packed["class_sizes"]
    L = len(class_sizes)
    F = packed["in_features"]
    F_pad, H_pad, C_pad = packed["F_pad"], packed["H_pad"], packed["C_pad"]

    B = x.shape[0]
    B8 = _round_up(max(B, 1), 8)            # sublane-align batch
    tb = min(B8, max_batch_tile)            # batch tile
    B_pad = _round_up(B8, tb)
    nb = B_pad // tb

    x_pad = jnp.zeros((B_pad, F_pad), jnp.bfloat16)
    x_pad = x_pad.at[:B, :F].set(x.astype(jnp.bfloat16))

    out = pl.pallas_call(
        _fused_heads_kernel,
        out_shape=jax.ShapeDtypeStruct((L, B_pad, C_pad), jnp.float32),
        grid=(nb, L),                        # level axis innermost (sequential)
        in_specs=[
            pl.BlockSpec((tb, F_pad), lambda b, l: (b, 0)),           # x (resident across levels)
            pl.BlockSpec((1, F_pad, H_pad), lambda b, l: (l, 0, 0)),  # W1x
            pl.BlockSpec((1, C_pad, H_pad), lambda b, l: (l, 0, 0)),  # W1prev
            pl.BlockSpec((1, 1, H_pad), lambda b, l: (l, 0, 0)),      # b1
            pl.BlockSpec((1, H_pad, C_pad), lambda b, l: (l, 0, 0)),  # W2
            pl.BlockSpec((1, 1, C_pad), lambda b, l: (l, 0, 0)),      # b2
        ],
        out_specs=pl.BlockSpec((1, tb, C_pad), lambda b, l: (l, b, 0)),
        scratch_shapes=[pltpu.VMEM((tb, C_pad), jnp.float32)],  # prev logits carry
        compiler_params=pltpu.CompilerParams(
            dimension_semantics=("parallel", "arbitrary")),
    )(x_pad, packed["w1x"], packed["w1p"], packed["b1"],
      packed["w2"], packed["b2"])

    # Strip padding (lanes beyond class_sizes[i], sublanes beyond B).
    return [out[i, :B, :c] for i, c in enumerate(class_sizes)]


# ----------------------------------------------------------------------------
# Pure-JAX f32 reference (mirrors the PyTorch forward exactly).
# ----------------------------------------------------------------------------
def _reference_forward(x, params):
    outputs = []
    cur = x
    for (w1, b1, w2, b2) in params:
        h = jnp.maximum(cur @ w1 + b1, 0.0)
        logits = h @ w2 + b2
        outputs.append(logits)
        cur = jnp.concatenate((x, logits), axis=1)
    return outputs


if __name__ == "__main__":
    key = jax.random.PRNGKey(0)
    batch = 2
    in_features = 32
    class_sizes = [7, 19]

    key, xk = jax.random.split(key)
    x = jax.random.normal(xk, (batch, in_features), jnp.float32)

    params = init_multilevel_head_params(key, in_features, class_sizes)
    packed = pack_multilevel_params(params, in_features, class_sizes)

    outs = multilevel_classification_head(x, packed)
    outs = [jax.block_until_ready(o) for o in outs]

    refs = _reference_forward(x, params)
    for o, r, c in zip(outs, refs, class_sizes):
        assert o.shape == (batch, c), (o.shape, c)
        # bf16 matmul operands with f32 accumulation -> loosened tolerance.
        max_err = float(jnp.max(jnp.abs(o - r)))
        assert jnp.allclose(o, r, atol=5e-2, rtol=5e-2), (
            f"mismatch vs reference, max_err={max_err}")

    print("KERNEL_OK")
</pallas_src>

<mosaic_0001>
module attributes {stable_mosaic.version = 11 : i64} {
  func.func @_fused_heads_kernel(%arg0: i32, %arg1: i32, %arg2: memref<8x128xbf16, #tpu.memory_space<vmem>>, %arg3: memref<1x128x128xbf16, #tpu.memory_space<vmem>>, %arg4: memref<1x128x128xbf16, #tpu.memory_space<vmem>>, %arg5: memref<1x1x128xf32, #tpu.memory_space<vmem>>, %arg6: memref<1x128x128xbf16, #tpu.memory_space<vmem>>, %arg7: memref<1x1x128xf32, #tpu.memory_space<vmem>>, %arg8: memref<1x8x128xf32, #tpu.memory_space<vmem>>, %arg9: memref<8x128xf32, #tpu.memory_space<vmem>>) attributes {dimension_semantics = [#tpu.dimension_semantics<parallel>, #tpu.dimension_semantics<arbitrary>], iteration_bounds = array<i64: 1, 2>, scalar_prefetch = 0 : i64, scratch_operands = 1 : i64, tpu.core_type = #tpu.core_type<tc>, window_params = [{transform_indices = @transform_0, window_bounds = array<i64: 8, 128>}, {transform_indices = @transform_1, window_bounds = array<i64: 1, 128, 128>}, {transform_indices = @transform_2, window_bounds = array<i64: 1, 128, 128>}, {transform_indices = @transform_3, window_bounds = array<i64: 1, 1, 128>}, {transform_indices = @transform_4, window_bounds = array<i64: 1, 128, 128>}, {transform_indices = @transform_5, window_bounds = array<i64: 1, 1, 128>}, {transform_indices = @transform_6, window_bounds = array<i64: 1, 8, 128>}]} {
    %c0_i32 = arith.constant 0 : i32
    %0 = arith.cmpi eq, %arg1, %c0_i32 : i32
    %1 = arith.extui %0 : i1 to i32
    %c0_i32_0 = arith.constant 0 : i32
    %2 = arith.cmpi ne, %1, %c0_i32_0 : i32
    scf.if %2 {
      %cst_27 = arith.constant 0.000000e+00 : f32
      %31 = vector.broadcast %cst_27 : f32 to vector<8x128xf32>
      %c0_28 = arith.constant 0 : index
      %c0_29 = arith.constant 0 : index
      %32 = vector.load %arg9[%c0_28, %c0_29] : memref<8x128xf32, #tpu.memory_space<vmem>>, vector<8x128xf32>
      tpu.vector_store %arg9[%c0_28, %c0_29], %31 {strides = array<i32>} : memref<8x128xf32, #tpu.memory_space<vmem>>, vector<8x128xf32>,
    } else {
    }
    %c0 = arith.constant 0 : index
    %c0_1 = arith.constant 0 : index
    %3 = vector.load %arg2[%c0, %c0_1] : memref<8x128xbf16, #tpu.memory_space<vmem>>, vector<8x128xbf16>
    %c0_2 = arith.constant 0 : index
    %c0_3 = arith.constant 0 : index
    %4 = vector.load %arg9[%c0_2, %c0_3] : memref<8x128xf32, #tpu.memory_space<vmem>>, vector<8x128xf32>
    %5 = arith.truncf %4 : vector<8x128xf32> to vector<8x128xbf16>
    %c0_4 = arith.constant 0 : index
    %c0_5 = arith.constant 0 : index
    %c0_6 = arith.constant 0 : index
    %6 = vector.load %arg3[%c0_4, %c0_5, %c0_6] : memref<1x128x128xbf16, #tpu.memory_space<vmem>>, vector<1x128x128xbf16>
    %7 = vector.shape_cast %6 : vector<1x128x128xbf16> to vector<128x128xbf16>
    %cst = arith.constant dense<0.000000e+00> : vector<8x128xf32>
    %8 = tpu.matmul %3, %7, %cst {dimension_numbers = #tpu.dot_dimension_numbers<[1], [0], [0], [1], [0, 0, 1, 1], [], []>} : vector<8x128xbf16>, vector<128x128xbf16>, vector<8x128xf32> -> vector<8x128xf32>
    %c0_7 = arith.constant 0 : index
    %c0_8 = arith.constant 0 : index
    %c0_9 = arith.constant 0 : index
    %9 = vector.load %arg4[%c0_7, %c0_8, %c0_9] : memref<1x128x128xbf16, #tpu.memory_space<vmem>>, vector<1x128x128xbf16>
    %10 = vector.shape_cast %9 : vector<1x128x128xbf16> to vector<128x128xbf16>
    %cst_10 = arith.constant dense<0.000000e+00> : vector<8x128xf32>
    %11 = tpu.matmul %5, %10, %cst_10 {dimension_numbers = #tpu.dot_dimension_numbers<[1], [0], [0], [1], [0, 0, 1, 1], [], []>} : vector<8x128xbf16>, vector<128x128xbf16>, vector<8x128xf32> -> vector<8x128xf32>
    %12 = arith.addf %8, %11 : vector<8x128xf32>
    %c0_11 = arith.constant 0 : index
    %c0_12 = arith.constant 0 : index
    %c0_13 = arith.constant 0 : index
    %13 = vector.load %arg5[%c0_11, %c0_12, %c0_13] : memref<1x1x128xf32, #tpu.memory_space<vmem>>, vector<1x1x128xf32>
    %14 = vector.shape_cast %13 : vector<1x1x128xf32> to vector<1x128xf32>
    %15 = vector.broadcast %14 : vector<1x128xf32> to vector<8x128xf32>
    %16 = arith.addf %12, %15 : vector<8x128xf32>
    %cst_14 = arith.constant 0.000000e+00 : f32
    %17 = vector.broadcast %cst_14 : f32 to vector<8x128xf32>
    %18 = arith.maximumf %16, %17 : vector<8x128xf32>
    %19 = arith.truncf %18 : vector<8x128xf32> to vector<8x128xbf16>
    %c0_15 = arith.constant 0 : index
    %c0_16 = arith.constant 0 : index
    %c0_17 = arith.constant 0 : index
    %20 = vector.load %arg6[%c0_15, %c0_16, %c0_17] : memref<1x128x128xbf16, #tpu.memory_space<vmem>>, vector<1x128x128xbf16>
    %21 = vector.shape_cast %20 : vector<1x128x128xbf16> to vector<128x128xbf16>
    %cst_18 = arith.constant dense<0.000000e+00> : vector<8x128xf32>
    %22 = tpu.matmul %19, %21, %cst_18 {dimension_numbers = #tpu.dot_dimension_numbers<[1], [0], [0], [1], [0, 0, 1, 1], [], []>} : vector<8x128xbf16>, vector<128x128xbf16>, vector<8x128xf32> -> vector<8x128xf32>
    %c0_19 = arith.constant 0 : index
    %c0_20 = arith.constant 0 : index
    %c0_21 = arith.constant 0 : index
    %23 = vector.load %arg7[%c0_19, %c0_20, %c0_21] : memref<1x1x128xf32, #tpu.memory_space<vmem>>, vector<1x1x128xf32>
    %24 = vector.shape_cast %23 : vector<1x1x128xf32> to vector<1x128xf32>
    %25 = vector.broadcast %24 : vector<1x128xf32> to vector<8x128xf32>
    %26 = arith.addf %22, %25 : vector<8x128xf32>
    %c0_22 = arith.constant 0 : index
    %c0_23 = arith.constant 0 : index
    %c0_24 = arith.constant 0 : index
    %27 = vector.load %arg8[%c0_22, %c0_23, %c0_24] : memref<1x8x128xf32, #tpu.memory_space<vmem>>, vector<1x8x128xf32>
    %28 = vector.shape_cast %27 : vector<1x8x128xf32> to vector<8x128xf32>
    %29 = vector.shape_cast %26 : vector<8x128xf32> to vector<1x8x128xf32>
    tpu.vector_store %arg8[%c0_22, %c0_23, %c0_24], %29 {strides = array<i32>} : memref<1x8x128xf32, #tpu.memory_space<vmem>>, vector<1x8x128xf32>,
    %c0_25 = arith.constant 0 : index
    %c0_26 = arith.constant 0 : index
    %30 = vector.load %arg9[%c0_25, %c0_26] : memref<8x128xf32, #tpu.memory_space<vmem>>, vector<8x128xf32>
    tpu.vector_store %arg9[%c0_25, %c0_26], %26 {strides = array<i32>} : memref<8x128xf32, #tpu.memory_space<vmem>>, vector<8x128xf32>,
    return
  }
  func.func @transform_0(%arg0: i32, %arg1: i32) -> (i32, i32) {
    %c0_i32 = arith.constant 0 : i32
    %c0_i32_0 = arith.constant 0 : i32
    return %arg0, %c0_i32 : i32, i32
  }
  func.func @transform_1(%arg0: i32, %arg1: i32) -> (i32, i32, i32) {
    %c0_i32 = arith.constant 0 : i32
    %c0_i32_0 = arith.constant 0 : i32
    %c0_i32_1 = arith.constant 0 : i32
    return %arg1, %c0_i32, %c0_i32_0 : i32, i32, i32
  }
  func.func @transform_2(%arg0: i32, %arg1: i32) -> (i32, i32, i32) {
    %c0_i32 = arith.constant 0 : i32
    %c0_i32_0 = arith.constant 0 : i32
    %c0_i32_1 = arith.constant 0 : i32
    return %arg1, %c0_i32, %c0_i32_0 : i32, i32, i32
  }
  func.func @transform_3(%arg0: i32, %arg1: i32) -> (i32, i32, i32) {
    %c0_i32 = arith.constant 0 : i32
    %c0_i32_0 = arith.constant 0 : i32
    %c0_i32_1 = arith.constant 0 : i32
    return %arg1, %c0_i32, %c0_i32_0 : i32, i32, i32
  }
  func.func @transform_4(%arg0: i32, %arg1: i32) -> (i32, i32, i32) {
    %c0_i32 = arith.constant 0 : i32
    %c0_i32_0 = arith.constant 0 : i32
    %c0_i32_1 = arith.constant 0 : i32
    return %arg1, %c0_i32, %c0_i32_0 : i32, i32, i32
  }
  func.func @transform_5(%arg0: i32, %arg1: i32) -> (i32, i32, i32) {
    %c0_i32 = arith.constant 0 : i32
    %c0_i32_0 = arith.constant 0 : i32
    %c0_i32_1 = arith.constant 0 : i32
    return %arg1, %c0_i32, %c0_i32_0 : i32, i32, i32
  }
  func.func @transform_6(%arg0: i32, %arg1: i32) -> (i32, i32, i32) {
    %c0_i32 = arith.constant 0 : i32
    %c0_i32_0 = arith.constant 0 : i32
    return %arg1, %arg0, %c0_i32 : i32, i32, i32
  }
}

</mosaic_0001>

<bundles_post_ra>
// kernel: tpu_custom_call.1
= control target key start
LH: loop header
LB: loop body
LE: loop exit
PB: predicated region body
PF: predicated region fallthrough
CT: control target
= control target key end

     0   :  { %s1823_s0 = inlined_call_operand.hbm [shape: bf16[8,128], index: 0, kind: input, shape index: {}]   ;;  %s1824_s1 = inlined_call_operand.hbm [shape: bf16[2,128,128], index: 1, kind: input, shape index: {}]   ;;  %s1825_s2 = inlined_call_operand.hbm [shape: bf16[2,128,128], index: 2, kind: input, shape index: {}]   ;;  %s1826_s3 = inlined_call_operand.vmem [shape: f32[2,1,128], index: 3, kind: input, shape index: {}]   ;;  %s1827_s4 = inlined_call_operand.hbm [shape: bf16[2,128,128], index: 4, kind: input, shape index: {}]   ;;  %s1828_s5 = inlined_call_operand.vmem [shape: f32[2,1,128], index: 5, kind: input, shape index: {}]   ;;  %s1829_s6 = inlined_call_operand.hbm [shape: f32[2,8,128], index: 6, kind: output, shape index: {}]  }
   0x1   :  { %1849 = sst [smem:[#allocation21_spill]] %s1824_s1 }
   0x2   :  { %1850 = sst [smem:[#allocation22_spill]] %s1825_s2 }
   0x3   :  { %11 = vsyncpa [#allocation4], 0 }
   0x4   :  { %12 = vsyncpa [#allocation7], 0 }
   0x5   :  { %14 = vsyncpa [#allocation7 + $0x1], 0 }
   0x6   :  { %15 = vsyncpa [#allocation10], 0 }
   0x7   :  { %17 = vsyncpa [#allocation10 + $0x1], 0 }
   0x8   :  { %18 = vsyncpa [#allocation5], 0 }
   0x9   :  { %20 = vsyncpa [#allocation5 + $0x1], 0  ;;  %s1426_s21 = smov 0   ;;  %s1428_s22 = smov 0  }
   0xa   :  { %s1430_s23 = smov 0   ;;  %s1432_s24 = smov 0  }
   0xb   :  { %s1434_s25 = smov 0   ;;  %s1436_s26 = smov 0  }
   0xc LB: > { %1851 = sst [smem:[#allocation16_spill]] %s1375_s25  ;;  %s35_s27 = sadd.s32 1, %s1375_s25  ;;  %s1379_s26 = sphi %s1436_s26, %s26_s26   ;;  %s1375_s25 = sphi %s1434_s25, %s1883_s25   ;;  %s1371_s24 = sphi %s1432_s24, %s1882_s24   ;;  %s1367_s23 = sphi %s1430_s23, %s1886_s23   ;;  %s1363_s22 = sphi %s1428_s22, %s1885_s22   ;;  %s1359_s21 = sphi %s1426_s21, %s1884_s21  }
   0xd   : > { %1852 = sst [smem:[#allocation17_spill]] %s1379_s26  ;;  %s71_s28 = sadd.s32 1, %s1367_s23 }
   0xe   : > { %p36_p0 = scmp.ge.s32.totalorder %s35_s27, 2  ;;  %p1830_p1 = scmp.ne.s32.totalorder %s1367_s23, %s1363_s22 }
   0xf   : > { %p79_p2 = scmp.eq.s32.totalorder %s1379_s26, 0  ;;  %p1090_p5 = scmp.lt.s32.totalorder %s1379_s26, 2 }
  0x10   : > { %s1888_s27 = smov (%p36_p0, %s35_s27), 0  ;;  %s253_s30 = sand.u32 1, %s1379_s26  }
  0x11   : > { %1853 = sst [smem:[#allocation18_spill]] %s1888_s27  ;;  %p80_p4 = por %p79_p2, %p1830_p1 }
  0x12   : > { %s68_s29 = ssub.s32 %s1375_s25, %s1888_s27  ;;  %s1831_s7 = sand.u32 1, %s1367_s23  }
  0x13   : > { %p69_p6 = scmp.eq.s32.totalorder %s68_s29, 0  ;;  %s1473_s8 = sshll.u32 %s1375_s25, 10 }
  0x14   : > { %s1480_s10 = sshll.u32 %s1831_s7, 6  ;;  %s1855_s1 = sld [smem:[#allocation21_spill]] }
  0x15   : > { %s1476_s9 = scalar_select %p69_p6, %s1367_s23, %s71_s28  }
  0x16   : > { %p1488_p7 = pnand %p1090_p5, %p80_p4  ;;  %s257_s15 = scalar_lea.vmem [#allocation6], %s1480_s10 }
  0x17   : > { %1854 = sst [smem:[#allocation19_spill]] %s1476_s9  ;;  %s264_s16 = sshll.u32 %s257_s15, 4  ;;  %s1493_s16 = int_to_ptr.vmem [resolvable:$true] %s264_s16 }
  0x18   : > { %s1856_s14 = scalar_select %p1488_p7, 1, 0 }
  0x19   : > { %s1495_s17 = scalar_lea.sflag [#allocation7], %s253_s30  ;;  %p1501_p9 = pneg %p1488_p7 }
  0x1a   : > { %s1486_s13 = scalar_lea.hbm %s1855_s1, %s1473_s8  ;;  %s1176_s29 = scalar_lea.hbm %s1855_s1, 2048 }
  0x1b   : > { %s1171_s18 = scalar_lea.hbm %s1486_s13, 1024  ;;  %p1177_p12 = scmp.lt.u32.totalorder %s1486_s13, %s1855_s1 }
  0x1c   : > { %p1172_p8 = scmp.ne.s32.totalorder %s1486_s13, %s1171_s18  ;;  %p1178_p13 = scmp.lt.u32.totalorder %s1176_s29, %s1171_s18 }
  0x1d   : > { %s1857_s19 = scalar_select %p1501_p9, 1, 0 }
  0x1e   : > { %p1174_p10 = pnand %p1501_p9, %p1172_p8  ;;  %p1179_p0 = por %p1178_p13, %p1177_p12 }
  0x1f   : > { %p1180_p2 = scmp.lt.u32.totalorder %s1171_s18, %s1486_s13 }
  0x20   : > { %p1175_p11 = pneg %p1174_p10 }
  0x21   : > { %p1181_p4 = por %p1180_p2, %p1179_p0 }
  0x23   : > { %p1182_p5 = pnand %p1181_p4, %p1175_p11 }
  0x25   : > { %1185 = shalt.err (!%p1182_p5)
}
  0x26   : > { %s1186_s30 = scalar_lea.vmem %s1493_s16, 1024  ;;  %s1381_s15 = smov [#allocation6]  }
  0x27   : > { %p1187_p6 = scmp.ne.s32.totalorder %s1493_s16, %s1186_s30  ;;  %s1191_s20 = sshll.u32 %s1381_s15, 4  ;;  %s1192_s20 = int_to_ptr.vmem [resolvable:$false] %s1191_s20 }
  0x28   : > { %s1193_s28 = scalar_lea.vmem %s1192_s20, 2048  ;;  %p1194_p3 = scmp.lt.s32.totalorder %s1493_s16, %s1192_s20 }
  0x29   : > { %p1189_p8 = pnand %p1187_p6, %p1501_p9  ;;  %p1195_p1 = scmp.lt.s32.totalorder %s1193_s28, %s1186_s30 }
  0x2b   : > { %p1190_p10 = pneg %p1189_p8  ;;  %p1196_p12 = por %p1195_p1, %p1194_p3 }
  0x2d   : > { %p1197_p13 = pnand %p1196_p12, %p1190_p10 }
  0x2f   : > { %1200 = shalt.err (!%p1197_p13)
}
  0x30   : > { %s1832_s18 = smov 64   ;;  %s1834_s29 = smov 4  }
  0x31   : > { %1078 = dma.hbm_to_vmem [thread:$0]  (!%p1488_p7), %s1486_s13, 1024, %s1493_s16, %s1495_s17, %s1832_s18, %s1832_s18, %s1834_s29  }
  0x32   : > { %s1529_s11 = sadd.s32 4294967295, %s1379_s26   ;;  %s919_s12 = sadd.s32 4294967294, %s1379_s26  }
  0x33   : > { %p84_p1 = scmp.ne.s32.totalorder %s1363_s22, %s1359_s21  ;;  %p1840_p3 = scmp.eq.s32.totalorder %s1529_s11, 0 }
  0x34   : > { %p214_p11 = scmp.eq.s32.totalorder %s1529_s11, 1  ;;  %p220_p0 = scmp.eq.s32.totalorder %s919_s12, 1 }
  0x35   : > { %p920_p2 = scmp.ge.s32.totalorder %s1379_s26, 1  ;;  %p1539_p4 = por %p1840_p3, %p84_p1 }
  0x36   : > { %p1859_p5 = scmp.ne.s32.totalorder %s1367_s23, %s1363_s22  ;;  %p1550_p8 = por %p220_p0, %p84_p1 }
  0x37   : > { %s1858_s30 = scalar_select %p1539_p4, 1, 0 }
  0x38   : > { %p1546_p6 = por %p214_p11, %p1859_p5  ;;  %p227_p10 = scmp.lt.s32.totalorder %s1379_s26, 3 }
  0x39   : > { %s1861_s16 = scalar_select %p1550_p8, 1, 0 }
  0x3a   : > { %s1860_s13 = scalar_select %p1546_p6, 1, 0 }
  0x3b   : > { %1862 = sst [smem:[#allocation20_spill]] %s1861_s16  ;;  %p1555_p12 = pnand %p920_p2, %p227_p10 }
  0x3c   : > { %s1384_s20 = smov [#allocation3]   ;;  %s1864_s2 = sld [smem:[#allocation22_spill]] }
  0x3d   : > { %s1863_s15 = scalar_select %p1555_p12, 1, 0 }
  0x3e   : > { %s242_s28 = sshll.u32 %s1384_s20, 4  ;;  %p1071_p13 = pneg %p1555_p12  ;;  %s1559_s28 = int_to_ptr.vmem [resolvable:$true] %s242_s28 }
  0x3f   : > { %s278_s29 = scalar_lea.vmem [#allocation8], %s1480_s10 }
  0x40   : > { %s285_s1 = sshll.u32 %s278_s29, 4  ;;  %p1572_p1 = pnand %p1071_p13, %p1840_p3  ;;  %s1576_s1 = int_to_ptr.vmem [resolvable:$true] %s285_s1 }
  0x42   : > { %s1567_s18 = scalar_lea.hbm %s1864_s2, %s1473_s8  ;;  %s1206_s25 = scalar_lea.hbm %s1864_s2, 2048 }
  0x43   : > { %s1865_s27 = scalar_select %p1572_p1, 1, 0 }
  0x44   : > { %s1201_s20 = scalar_lea.hbm %s1567_s18, 1024  ;;  %p1207_p5 = scmp.lt.u32.totalorder %s1567_s18, %s1864_s2 }
  0x45   : > { %p1202_p11 = scmp.ne.s32.totalorder %s1567_s18, %s1201_s20  ;;  %p1208_p10 = scmp.lt.u32.totalorder %s1206_s25, %s1201_s20 }
  0x46   : > { %p1210_p3 = scmp.lt.u32.totalorder %s1201_s20, %s1567_s18 }
  0x47   : > { %p1204_p0 = pnand %p1202_p11, %p1501_p9  ;;  %p1209_p13 = por %p1208_p10, %p1207_p5 }
  0x49   : > { %p1205_p2 = pneg %p1204_p0  ;;  %p1211_p8 = por %p1210_p3, %p1209_p13 }
  0x4b   : > { %p1212_p6 = pnand %p1211_p8, %p1205_p2 }
  0x4d   : > { %1215 = shalt.err (!%p1212_p6)
}
  0x4e   : > { %s1216_s29 = scalar_lea.vmem %s1576_s1, 1024  ;;  %s1385_s7 = smov [#allocation8]  }
  0x4f   : > { %p1217_p11 = scmp.ne.s32.totalorder %s1576_s1, %s1216_s29  ;;  %s1221_s12 = sshll.u32 %s1385_s7, 4  ;;  %s1222_s12 = int_to_ptr.vmem [resolvable:$false] %s1221_s12 }
  0x50   : > { %s1223_s26 = scalar_lea.vmem %s1222_s12, 2048  ;;  %p1224_p12 = scmp.lt.s32.totalorder %s1576_s1, %s1222_s12 }
  0x51   : > { %p1219_p0 = pnand %p1217_p11, %p1501_p9  ;;  %p1225_p1 = scmp.lt.s32.totalorder %s1223_s26, %s1216_s29 }
  0x53   : > { %p1220_p4 = pneg %p1219_p0  ;;  %p1226_p5 = por %p1225_p1, %p1224_p12 }
  0x55   : > { %p1227_p10 = pnand %p1226_p5, %p1220_p4 }
  0x57   : > { %1230 = shalt.err (!%p1227_p10)
}
  0x58   : > { %s1866_s25 = smov 4   ;;  %s1867_s9 = smov 64  }
  0x59   : > { %1081 = dma.hbm_to_vmem [thread:$0]  (!%p1488_p7), %s1567_s18, 1024, %s1576_s1, %s1495_s17, %s1867_s9, %s1867_s9, %s1866_s25  }
  0x5a   : > { %s1231_s7 = scalar_lea.hbm %s1823_s0, 64  ;;  %p1868_p4 = scmp.ne.s32.totalorder %s1865_s27, 0 }
  0x5b   : > { %p1232_p3 = scmp.ne.s32.totalorder %s1823_s0, %s1231_s7  ;;  %p1238_p1 = scmp.lt.u32.totalorder %s1231_s7, %s1823_s0 }
  0x5c   : > { %p1233_p6 = pneg %p1868_p4 }
  0x5e   : > { %p1234_p8 = pnand %p1233_p6, %p1232_p3 }
  0x60   : > { %p1235_p12 = pneg %p1234_p8 }
  0x62   : > { %p1240_p2 = pnand %p1238_p1, %p1235_p12 }
  0x64   : > { %1243 = shalt.err (!%p1240_p2)
}
  0x65   : > { %s1244_s1 = scalar_lea.vmem %s1559_s28, 64  ;;  %p1252_p5 = scmp.lt.s32.totalorder %s1559_s28, %s1559_s28 }
  0x66   : > { %p1245_p13 = scmp.ne.s32.totalorder %s1559_s28, %s1244_s1  ;;  %p1253_p10 = scmp.lt.s32.totalorder %s1244_s1, %s1244_s1 }
  0x68   : > { %p1247_p11 = pnand %p1245_p13, %p1233_p6  ;;  %p1254_p7 = por %p1253_p10, %p1252_p5 }
  0x6a   : > { %p1248_p0 = pneg %p1247_p11 }
  0x6c   : > { %p1255_p9 = pnand %p1254_p7, %p1248_p0 }
  0x6e   : > { %1258 = shalt.err (!%p1255_p9)
}
  0x6f   : > { %1074 = dma.hbm_to_vmem [thread:$0]  (!%p1868_p4), %s1823_s0, 64, %s1559_s28, [#allocation4]  }
  0x70   : > { %s1628_s20 = scalar_lea.hbm %s1827_s4, %s1473_s8  ;;  %s305_s7 = scalar_lea.vmem [#allocation9], %s1480_s10 }
  0x71   : > { %s312_s27 = sshll.u32 %s305_s7, 4  ;;  %s1869_s12 = sand.u32 1, %s1367_s23   ;;  %s1631_s27 = int_to_ptr.vmem [resolvable:$true] %s312_s27 }
  0x72   : > { %s1635_s29 = scalar_lea.sflag [#allocation10], %s1869_s12  ;;  %s1259_s26 = scalar_lea.hbm %s1628_s20, 1024 }
  0x73   : > { %p1260_p7 = scmp.ne.s32.totalorder %s1628_s20, %s1259_s26  ;;  %p1870_p9 = scmp.ne.s32.totalorder %s1857_s19, 0 }
  0x74   : > { %s1264_s8 = scalar_lea.hbm %s1827_s4, 2048  ;;  %p1265_p6 = scmp.lt.u32.totalorder %s1628_s20, %s1827_s4 }
  0x75   : > { %p1262_p3 = pnand %p1260_p7, %p1870_p9  ;;  %p1266_p8 = scmp.lt.u32.totalorder %s1264_s8, %s1259_s26 }
  0x76   : > { %p1268_p1 = scmp.lt.u32.totalorder %s1259_s26, %s1628_s20 }
  0x77   : > { %p1263_p4 = pneg %p1262_p3  ;;  %p1267_p12 = por %p1266_p8, %p1265_p6 }
  0x79   : > { %p1269_p2 = por %p1268_p1, %p1267_p12 }
  0x7b   : > { %p1270_p13 = pnand %p1269_p2, %p1263_p4 }
  0x7d   : > { %1273 = shalt.err (!%p1270_p13)
}
  0x7e   : > { %s1274_s10 = scalar_lea.vmem %s1631_s27, 1024  ;;  %s1386_s18 = smov [#allocation9]  }
  0x7f   : > { %p1275_p11 = scmp.ne.s32.totalorder %s1631_s27, %s1274_s10  ;;  %s1279_s16 = sshll.u32 %s1386_s18, 4  ;;  %s1280_s16 = int_to_ptr.vmem [resolvable:$false] %s1279_s16 }
  0x80   : > { %s1281_s7 = scalar_lea.vmem %s1280_s16, 2048  ;;  %p1282_p10 = scmp.lt.s32.totalorder %s1631_s27, %s1280_s16 }
  0x81   : > { %p1277_p0 = pnand %p1275_p11, %p1870_p9  ;;  %p1283_p7 = scmp.lt.s32.totalorder %s1281_s7, %s1274_s10 }
  0x83   : > { %p1278_p5 = pneg %p1277_p0  ;;  %p1284_p3 = por %p1283_p7, %p1282_p10 }
  0x85   : > { %p1285_p6 = pnand %p1284_p3, %p1278_p5 }
  0x87   : > { %1288 = shalt.err (!%p1285_p6)
}
  0x88   : > { %p1871_p4 = scmp.ne.s32.totalorder %s1856_s14, 0  ;;  %p1872_p9 = scmp.ne.s32.totalorder %s1863_s15, 0 }
  0x89   : > { %p1873_p8 = scmp.eq.s32.totalorder (!%p1872_p9), %s1529_s11, 0 }
  0x8a   : > { %1084 = dma.hbm_to_vmem [thread:$0]  (!%p1871_p4), %s1628_s20, 1024, %s1631_s27, %s1635_s29, %s1867_s9, %s1867_s9, %s1866_s25  }
  0x8b   : > { %330 = sbr.rel (%p1872_p9) target bundleno = 647 (0x287), region = 44 }
  0x92   : > { %1342 = dma.done.wait (%p1873_p8), [#allocation4], 64   ;;  %p1874_p12 = pmov %p1873_p8 }
  0x93   : > { %s336_s14 = sand.u32 1, %s1529_s11   ;;  %s1670_s19 = sand.u32 1, %s1363_s22  }
  0x94   : > { %1344 = vsyncadd (%p1874_p12), [#allocation4], 4294967232  ;;  %s934_s12 = sshll.u32 %s1670_s19, 6  ;;  %s337_s26 = scalar_lea.sflag [#allocation7], %s336_s14 }
  0x95   : > { %s1673_s28 = scalar_lea.vmem [#allocation6], %s934_s12  ;;  %p1875_p1 = scmp.ne.s32.totalorder %s1858_s30, 0 }
  0x97   : > { %1346 = dma.done.wait (%p1875_p1), %s337_s26, 2048  }
  0x98   : > { %1348 = vsyncadd (%p1875_p1), %s337_s26, 4294965248  ;;  %s1679_s15 = scalar_lea.vmem [#allocation8], %s934_s12  ;;  %s355_s25 = scalar_lea.sflag [#allocation10], %s1670_s19 }
  0x99   : > { %s1682_s9 = scalar_lea.vmem [#allocation9], %s934_s12 }
  0x9a   : > { %1350 = dma.done.wait (%p1875_p1), %s355_s25, 1024  }
  0x9b   : > { %1352 = vsyncadd (%p1875_p1), %s355_s25, 4294966272  ;;  %s937_s11 = sshll.u32 %s1670_s19, 3  ;;  %p403_p2 = scmp.lt.s32.totalorder %s1371_s24, 1 }
  0x9c   : > { %s1701_s10 = scalar_lea.vmem [#allocation11], %s937_s11  ;;  %p938_p13 = scmp.ne.s32.totalorder %s1371_s24, 0 }
  0x9d   : > { %s1691_s20 = scalar_select %p403_p2, %s1371_s24, 1 }
  0x9e   : > { %413 = sbr.rel (%p938_p13) target bundleno = 165 (0xa5), region = 64  ;;  %v1387_v0 = vmov (!%p938_p13), 0.0  }
  0x9f   : > { %s405_s1 = scalar_lea.vmem %s1826_s3, %s1691_s20  ;;  %s408_s17 = scalar_lea.vmem %s1828_s5, %s1691_s20  ;;  %414 = vst [vmem:[#allocation2] sm:$0xff] (!%p938_p13), %v1387_v0 }
  0xa5 PF: > { %v1147_v1 = vld [vmem:[%s1679_s15] sm:$0xff]   ;;  %v1388_v2 = vmov 0.0   ;;  %v1149_v4 = vld [vmem:[%s1679_s15 + $0x8] sm:$0xff]   ;;  %vm1389_vm0 = vmmov 0   ;;  %v1151_v6 = vld [vmem:[%s1679_s15 + $0x10] sm:$0xff]   ;;  %s966_s14 = sshll.u32 %s1371_s24, 7 }
  0xa6   : > { %999 = vmatprep.subr.bf16.mxu0 %v1388_v2  ;;  %1019 = vmatprep.subr.bf16.mxu1 %v1388_v2  ;;  %v1148_v3 = vld [vmem:[%s1673_s28] sm:$0xff]   ;;  %v1150_v5 = vld [vmem:[%s1673_s28 + $0x8] sm:$0xff]   ;;  %v1152_v7 = vld [vmem:[%s1673_s28 + $0x10] sm:$0xff]   ;;  %s764_s12 = sshll.u32 %s1701_s10, 4  ;;  %s750_s25 = scalar_lea.sflag [#allocation5], %s1670_s19  ;;  %s1775_s12 = int_to_ptr.vmem [resolvable:$true] %s764_s12 }
  0xa7   : > { %1000 = vmatpush3.bf16.msra.mxu0 %v1147_v1  ;;  %1015 = vmatprep.mubr.msk.bf16.mxu0 %vm1389_vm0, %v1388_v2  ;;  %v1153_v8 = vld [vmem:[%s1679_s15 + $0x18] sm:$0xff]   ;;  %v1155_v10 = vld [vmem:[%s1679_s15 + $0x20] sm:$0xff]   ;;  %v1157_v12 = vld [vmem:[%s1679_s15 + $0x28] sm:$0xff]   ;;  %s1289_s24 = scalar_lea.vmem %s1775_s12, 128  ;;  %p1876_p0 = scmp.ne.s32.totalorder %s1860_s13, 0 }
  0xa8   : > { %1020 = vmatpush3.bf16.msra.mxu1 %v1148_v3  ;;  %1001 = vmatprep.subr.bf16.mxu0 %v1388_v2  ;;  %v1154_v9 = vld [vmem:[%s1673_s28 + $0x18] sm:$0xff]   ;;  %v1156_v11 = vld [vmem:[%s1673_s28 + $0x20] sm:$0xff]   ;;  %v1158_v13 = vld [vmem:[%s1673_s28 + $0x28] sm:$0xff]   ;;  %p1290_p11 = scmp.ne.s32.totalorder %s1775_s12, %s1289_s24 }
  0xa9   : > { %1021 = vmatprep.subr.bf16.mxu1 %v1388_v2  ;;  %1035 = vmatprep.mubr.msk.bf16.mxu1 %vm1389_vm0, %v1388_v2  ;;  %v1159_v14 = vld [vmem:[%s1679_s15 + $0x30] sm:$0xff]   ;;  %v1161_v16 = vld [vmem:[%s1679_s15 + $0x38] sm:$0xff]   ;;  %v1163_v20 = vld [vmem:[%s1682_s9] sm:$0xff]   ;;  %s1773_s15 = scalar_lea.hbm %s1829_s6, %s966_s14 }
  0xaa   : > { %v1160_v15 = vld [vmem:[%s1673_s28 + $0x30] sm:$0xff]   ;;  %v1162_v18 = vld [vmem:[%s1673_s28 + $0x38] sm:$0xff]   ;;  %v1164_v22 = vld [vmem:[%s1682_s9 + $0x8] sm:$0xff]   ;;  %p1291_p5 = pnand %p1290_p11, %p1876_p0 }
  0xab   : > { %1002 = vmatpush3.bf16.msra.mxu0 %v1149_v4  ;;  %v416_v17 = vld [vmem:[#allocation2] sm:$0xff]  ;;  %v415_v21 = vld [vmem:[#allocation3] sm:$0xf]  ;;  %v1167_v25 = vld [vmem:[%s1682_s9 + $0x20] sm:$0xff]  }
  0xac   : > { %1022 = vmatpush3.bf16.msra.mxu1 %v1150_v5  ;;  %1003 = vmatprep.subr.bf16.mxu0 %v1388_v2  ;;  %v417_v19 = vpack.c.bf16 %v416_v17, %v416_v17  ;;  %v1165_v23 = vld [vmem:[%s1682_s9 + $0x10] sm:$0xff]   ;;  %v1166_v24 = vld [vmem:[%s1682_s9 + $0x18] sm:$0xff]   ;;  %v1168_v26 = vld [vmem:[%s1682_s9 + $0x28] sm:$0xff]   ;;  %p1292_p10 = pneg %p1291_p5 }
  0xad   : > { %1023 = vmatprep.subr.bf16.mxu1 %v1388_v2  ;;  %v1169_v27 = vld [vmem:[%s1682_s9 + $0x30] sm:$0xff]   ;;  %v1170_v28 = vld [vmem:[%s1682_s9 + $0x38] sm:$0xff]   ;;  %s1390_s9 = smov [#allocation11]  }
  0xae   : > { %v955_v31 = vld [vmem:[%s405_s1] ss:$0 sm:$0xff]  ;;  %s1293_s11 = sshll.u32 %s1390_s9, 4  ;;  %s1294_s11 = int_to_ptr.vmem [resolvable:$false] %s1293_s11 }
  0xaf   : > { %1004 = vmatpush3.bf16.msra.mxu0 %v1151_v6  ;;  %v956_v42 = vld [vmem:[%s408_s17] ss:$0 sm:$0xff]  ;;  %s1295_s20 = scalar_lea.vmem %s1294_s11, 256  ;;  %p1296_p7 = scmp.lt.s32.totalorder %s1775_s12, %s1294_s11 }
  0xb0   : > { %1024 = vmatpush3.bf16.msra.mxu1 %v1152_v7  ;;  %1005 = vmatprep.subr.bf16.mxu0 %v1388_v2  ;;  %p1297_p3 = scmp.lt.s32.totalorder %s1295_s20, %s1289_s24 }
  0xb1   : > { %1025 = vmatprep.subr.bf16.mxu1 %v1388_v2 }
  0xb2   : > { %p1298_p6 = por %p1297_p3, %p1296_p7 }
  0xb3   : > { %1006 = vmatpush3.bf16.msra.mxu0 %v1153_v8 }
  0xb4   : > { %1026 = vmatpush3.bf16.msra.mxu1 %v1154_v9  ;;  %1007 = vmatprep.subr.bf16.mxu0 %v1388_v2  ;;  %p1299_p4 = pnand %p1298_p6, %p1292_p10 }
  0xb5   : > { %1027 = vmatprep.subr.bf16.mxu1 %v1388_v2 }
  0xb7   : > { %1008 = vmatpush3.bf16.msra.mxu0 %v1155_v10 }
  0xb8   : > { %1028 = vmatpush3.bf16.msra.mxu1 %v1156_v11  ;;  %1009 = vmatprep.subr.bf16.mxu0 %v1388_v2 }
  0xb9   : > { %1029 = vmatprep.subr.bf16.mxu1 %v1388_v2 }
  0xbb   : > { %1010 = vmatpush3.bf16.msra.mxu0 %v1157_v12 }
  0xbc   : > { %1030 = vmatpush3.bf16.msra.mxu1 %v1158_v13  ;;  %1011 = vmatprep.subr.bf16.mxu0 %v1388_v2 }
  0xbd   : > { %1031 = vmatprep.subr.bf16.mxu1 %v1388_v2 }
  0xbf   : > { %1012 = vmatpush3.bf16.msra.mxu0 %v1159_v14 }
  0xc0   : > { %1032 = vmatpush3.bf16.msra.mxu1 %v1160_v15  ;;  %1013 = vmatprep.subr.bf16.mxu0 %v1388_v2 }
  0xc1   : > { %1033 = vmatprep.subr.bf16.mxu1 %v1388_v2 }
  0xc3   : > { %1014 = vmatpush3.bf16.msra.mxu0 %v1161_v16 }
  0xc4   : > { %1034 = vmatpush3.bf16.msra.mxu1 %v1162_v18  ;;  %1039 = vmatprep.subr.bf16.mxu0 %v1388_v2 }
  0xc6   : > { %1016 = vmatmul.mubr.bf16.vlgmr.msra.gmra.mrb[0].mxu0 %v417_v19 }
  0xc7   : > { %1036 = vmatmul.mubr.bf16.vlgmr.msra.gmra.mrb[0].mxu1 %v415_v21  ;;  %1040 = vmatpush3.bf16.msra.mxu0 %v1163_v20 }
  0xc8   : > { %1041 = vmatprep.subr.bf16.mxu0 %v1388_v2  ;;  %1055 = vmatprep.mubr.msk.bf16.mxu0 %vm1389_vm0, %v1388_v2 }
  0xcb   : > { %1042 = vmatpush3.bf16.msra.mxu0 %v1164_v22 }
  0xcc   : > { %1043 = vmatprep.subr.bf16.mxu0 %v1388_v2 }
  0xcf   : > { %1044 = vmatpush3.bf16.msra.mxu0 %v1165_v23 }
  0xd0   : > { %1045 = vmatprep.subr.bf16.mxu0 %v1388_v2 }
  0xd3   : > { %1046 = vmatpush3.bf16.msra.mxu0 %v1166_v24 }
  0xd4   : > { %1047 = vmatprep.subr.bf16.mxu0 %v1388_v2 }
  0xd7   : > { %1048 = vmatpush3.bf16.msra.mxu0 %v1167_v25 }
  0xd8   : > { %1049 = vmatprep.subr.bf16.mxu0 %v1388_v2 }
  0xdb   : > { %1050 = vmatpush3.bf16.msra.mxu0 %v1168_v26 }
  0xdc   : > { %1051 = vmatprep.subr.bf16.mxu0 %v1388_v2 }
  0xdf   : > { %1052 = vmatpush3.bf16.msra.mxu0 %v1169_v27 }
  0xe0   : > { %1053 = vmatprep.subr.bf16.mxu0 %v1388_v2 }
  0xe3   : > { %1054 = vmatpush3.bf16.msra.mxu0 %v1170_v28 }
 0x199   : > { %v532_v29 = vpop.f32.mrb[0].mxu0 }
 0x19a   : > { %v620_v30 = vpop.f32.mrb[0].mxu1  ;;  %v1017_v32 = vpop.f32.mrb[1].mxu0 }
 0x19b   : > { %v621_v33 = vadd.f32 %v620_v30, %v532_v29  ;;  %v1037_v34 = vpop.f32.mrb[1].mxu1  ;;  %v535_v35 = vpop.f32.mrb[2].mxu0 }
 0x19c   : > { %v623_v36 = vpop.f32.mrb[2].mxu1  ;;  %v1018_v37 = vpop.f32.mrb[3].mxu0 }
 0x19d   : > { %v633_v38 = vadd.f32 %v955_v31, %v621_v33  ;;  %v1038_v39 = vpop.f32.mrb[3].mxu1 }
 0x19f   : > { %v634_v40 = vmax.f32 %v633_v38, 0.0 }
 0x1a1   : > { %v635_v41 = vpack.c.bf16 %v634_v40, %v634_v40 }
 0x1a3   : > { %1056 = vmatmul.mubr.bf16.vlgmr.msra.gmra.mrb[4].mxu0 %v635_v41 }
 0x276   : > { %v741_v43 = vpop.f32.mrb[4].mxu0 }
 0x277   : > { %v742_v44 = vadd.f32 %v956_v42, %v741_v43  ;;  %v1057_v45 = vpop.f32.mrb[5].mxu0 }
 0x278   : > { %v744_v46 = vpop.f32.mrb[6].mxu0 }
 0x279   : > { %747 = vst [vmem:[%s1701_s10] sm:$0xff] %v742_v44  ;;  %748 = vst [vmem:[#allocation2] sm:$0xff] %v742_v44  ;;  %v1058_v47 = vpop.f32.mrb[7].mxu0 }
 0x27a   : > { %1302 = shalt.err (!%p1299_p4)
}
 0x27b   : > { %s1303_s19 = scalar_lea.hbm %s1773_s15, 128  ;;  %s1307_s1 = scalar_lea.hbm %s1829_s6, 256 }
 0x27c   : > { %p1304_p9 = scmp.ne.s32.totalorder %s1773_s15, %s1303_s19  ;;  %p1308_p1 = scmp.lt.u32.totalorder %s1773_s15, %s1829_s6 }
 0x27d   : > { %p1309_p2 = scmp.lt.u32.totalorder %s1307_s1, %s1303_s19  ;;  %p1311_p11 = scmp.lt.u32.totalorder %s1303_s19, %s1773_s15 }
 0x27e   : > { %p1305_p8 = pnand %p1304_p9, %p1876_p0 }
 0x27f   : > { %p1310_p13 = por %p1309_p2, %p1308_p1 }
 0x280   : > { %p1306_p12 = pneg %p1305_p8 }
 0x281   : > { %p1312_p5 = por %p1311_p11, %p1310_p13 }
 0x283   : > { %p1313_p10 = pnand %p1312_p5, %p1306_p12 }
 0x285   : > { %1316 = shalt.err (!%p1313_p10)
}
 0x286   : > { %1069 = dma.vmem_to_hbm [thread:$0]  (%p1876_p0), %s1775_s12, 128, %s1773_s15, %s750_s25  }
 0x287 PF: > { %s1877_s17 = sld [smem:[#allocation20_spill]]  ;;  %s1878_s10 = sld [smem:[#allocation17_spill]] }
 0x288   : > { %s776_s30 = sand.u32 1, %s1359_s21  }
 0x289   : > { %s777_s18 = scalar_lea.sflag [#allocation5], %s776_s30 }
 0x28d   : > { %p1879_p7 = scmp.ne.s32.totalorder %s1877_s17, 0  ;;  %p1880_p3 = scmp.ge.s32.totalorder %s1878_s10, 2 }
 0x28f   : > { %p1086_p6 = pnand %p1880_p3, %p1879_p7 }
 0x291   : > { %1354 = dma.done.wait (!%p1086_p6), %s777_s18, 128  }
 0x292   : > { %1356 = vsyncadd (!%p1086_p6), %s777_s18, 4294967168  ;;  %s26_s26 = sadd.s32 1, %s1878_s10   ;;  %s1881_s13 = sld [smem:[#allocation19_spill]] }
 0x293   : > { %p23_p4 = scmp.ge.s32.totalorder %s26_s26, 4   ;;  %s1882_s24 = sld [smem:[#allocation16_spill]] }
 0x294   : > { %s1883_s25 = sld [smem:[#allocation18_spill]]  ;;  %s1884_s21 = smov %s1363_s22 }
 0x295   : > { %s1885_s22 = smov %s1367_s23  ;;  %25 = sbr.rel (!%p23_p4) target bundleno = 12 (0xc), region = 129 }
 0x298   : > { %s1886_s23 = smov %s1881_s13 }
 0x29c   :  { %782 = vsyncpa [#allocation4], 1 }
 0x29d   :  { %784 = vsyncpa [#allocation4 + $0x1], 1 }
 0x29e   :  { %785 = vsyncpa [#allocation7], 1 }
 0x29f   :  { %787 = vsyncpa [#allocation7 + $0x1], 1 }
 0x2a0   :  { %788 = vsyncpa [#allocation10], 1 }
 0x2a1   :  { %790 = vsyncpa [#allocation10 + $0x1], 1 }
 0x2a2   :  { %791 = vsyncpa [#allocation5], 1 }
 0x2a3   :  { %793 = vsyncpa [#allocation5 + $0x1], 1 }

</bundles_post_ra>
